<compile_context>
chip_gen: v7x
topology: tpu7x:2x2x1
jax: 0.10.0
libtpu: 0.0.40
codegen_flags: <defaults>
</compile_context>

<pallas_src>
import functools

import jax
import jax.numpy as jnp
from jax import lax
from jax.experimental import pallas as pl
from jax.experimental.pallas import tpu as pltpu


def _round_up(x, m):
    return ((x + m - 1) // m) * m


def _cdiv(a, b):
    return (a + b - 1) // b


def _vmem_budget_bytes():
    """Per-kernel scoped-VMEM ceiling derived from physical VMEM per core."""
    cap = 0
    try:
        cap = int(getattr(pltpu.get_tpu_info(), "vmem_capacity_bytes", 0) or 0)
    except Exception:
        cap = 0
    if cap <= 0:
        cap = 64 << 20                       # conservative default (v7x per-TC)
    # ~45% headroom for compiler-internal scratch; never ask for more than 64 MiB.
    return int(min(cap * 0.55, 64 << 20))


def _masked_softmax(g, c_real, c_pad):
    """Row softmax of g (Bt, Cp, Cp) with padded channel columns masked out."""
    if c_pad > c_real:
        col = lax.broadcasted_iota(jnp.int32, (c_pad, c_pad), 1)
        g = jnp.where((col < c_real)[None, :, :], g, jnp.float32(-1e30))
    m = jnp.max(g, axis=-1, keepdims=True)
    e = jnp.exp(g - m)
    s = jnp.sum(e, axis=-1, keepdims=True)
    return e / s                             # exact; runs once per batch block


def _fused_kernel(beta_ref, a_ref, o_ref, *, c_real, c_pad, feed_bf16):
    """Single pass: E = beta * (softmax(A1 A1^T)^T @ A1) + A1, slab resident."""
    a = a_ref[...]                                        # (Bt, Cp, Np) f32
    am = a.astype(jnp.bfloat16) if feed_bf16 else a
    # G[b, c, d] = sum_n A[b, c, n] * A[b, d, n]   (NT contraction, no .T)
    g = lax.dot_general(
        am, am,
        dimension_numbers=(((2,), (2,)), ((0,), (0,))),
        preferred_element_type=jnp.float32)
    x = _masked_softmax(g, c_real, c_pad)
    xm = x.astype(jnp.bfloat16) if feed_bf16 else x
    # XA1[b, d, n] = sum_c X[b, c, d] * A1[b, c, n]  (TN contraction, no .T)
    xa = lax.dot_general(
        xm, am,
        dimension_numbers=(((1,), (1,)), ((0,), (0,))),
        preferred_element_type=jnp.float32)
    o_ref[...] = (beta_ref[0] * xa + a).astype(o_ref.dtype)


def _gram_softmax_kernel(a_ref, x_ref, acc_ref, *, c_real, c_pad, feed_bf16):
    """Two-pass, pass 1: accumulate G over N tiles; softmax at the last tile."""
    nt = pl.program_id(1)

    @pl.when(nt == 0)
    def _():
        acc_ref[...] = jnp.zeros_like(acc_ref)

    a = a_ref[...]                                        # (Bt, Cp, tN)
    am = a.astype(jnp.bfloat16) if feed_bf16 else a
    acc_ref[...] += lax.dot_general(
        am, am,
        dimension_numbers=(((2,), (2,)), ((0,), (0,))),
        preferred_element_type=jnp.float32)

    @pl.when(nt == pl.num_programs(1) - 1)
    def _():
        x_ref[...] = _masked_softmax(acc_ref[...], c_real, c_pad).astype(x_ref.dtype)


def _apply_kernel(beta_ref, x_ref, a_ref, o_ref, *, feed_bf16):
    """Two-pass, pass 2: E = beta * (X^T @ A1) + A1, one N tile at a time."""
    a = a_ref[...]                                        # (Bt, Cp, tN) f32
    am = a.astype(jnp.bfloat16) if feed_bf16 else a
    xm = x_ref[...]                                       # (Bt, Cp, Cp)
    xa = lax.dot_general(
        xm, am,
        dimension_numbers=(((1,), (1,)), ((0,), (0,))),
        preferred_element_type=jnp.float32)
    o_ref[...] = (beta_ref[0] * xa + a).astype(o_ref.dtype)


def channel_attention(A, beta, *, _force_two_pass=False):
    """A: (B, C, H, W) float32; beta: (1,) float32. Returns E with A's shape."""
    B, C, H, W = A.shape
    N = H * W

    # --- static layout decisions -------------------------------------------
    feed_bf16 = C >= 16                       # tiny C: f32 feed (exact, no cast)
    Cp = _round_up(max(C, 1), 16 if feed_bf16 else 8)
    Np = _round_up(max(N, 1), 128)

    vmem_budget = _vmem_budget_bytes()
    big_part = vmem_budget >= (48 << 20)      # 128 MiB VMEM parts (v5e / v6e)
    tile_target = (8 << 20) if big_part else (5 << 20)

    # Batch fusion for small slabs (amortizes grid-step overhead), then cap so
    # there are >= 2 batch blocks whenever B >= 2 (megacore sharding).
    slab_bytes = Cp * Np * 4
    Bt = min(B, max(1, tile_target // max(slab_bytes, 1)))
    if B >= 2:
        Bt = max(1, min(Bt, B // 2))
    Bp = _round_up(B, Bt)
    num_bb = Bp // Bt

    x_dtype = jnp.bfloat16 if feed_bf16 else jnp.float32
    x_bytes = Bt * Cp * Cp * (2 if feed_bf16 else 4)
    gram_bytes = Bt * Cp * Cp * 4
    slab_blk = Bt * Cp * Np * 4

    A1 = A.reshape(B, C, N)

    # --- fused single-pass path (preferred) ---------------------------------
    # VMEM need: 2x in + 2x out (double buffered) + XA1 temp + ~3 (Cp,Cp) f32
    # intermediates + bf16 operand copies + headroom.
    bf16_copies = (Bt * Cp * Np * 2 + Bt * Cp * Cp * 2) if feed_bf16 else 0
    fused_need = 5 * slab_blk + 3 * gram_bytes + bf16_copies + (2 << 20)

    if fused_need <= vmem_budget and not _force_two_pass:
        if (Bp, Cp, Np) != (B, C, N):
            A1 = jnp.pad(A1, ((0, Bp - B), (0, Cp - C), (0, Np - N)))
        fused = functools.partial(
            _fused_kernel, c_real=C, c_pad=Cp, feed_bf16=feed_bf16)
        E = pl.pallas_call(
            fused,
            out_shape=jax.ShapeDtypeStruct((Bp, Cp, Np), A.dtype),
            grid_spec=pltpu.PrefetchScalarGridSpec(
                num_scalar_prefetch=0,
                grid=(num_bb,),
                in_specs=[
                    pl.BlockSpec(memory_space=pltpu.SMEM),               # beta
                    pl.BlockSpec((Bt, Cp, Np), lambda bb: (bb, 0, 0)),   # A1
                ],
                out_specs=pl.BlockSpec((Bt, Cp, Np), lambda bb: (bb, 0, 0)),
            ),
            compiler_params=pltpu.CompilerParams(
                dimension_semantics=("parallel",),
                vmem_limit_bytes=vmem_budget),
        )(beta, A1)
        return E[:B, :C, :N].reshape(B, C, H, W)

    # --- two-pass fallback (slab too large for VMEM) -------------------------
    # N tile: as large as the budget allows (pass-2 live cost ~5x the streamed
    # tile), chosen as a near-equal 128-aligned split of Np to avoid padding.
    fixed = 2 * x_bytes + gram_bytes + (2 << 20)
    a_tile_budget = max(1 << 20, vmem_budget - fixed)
    a_tile_target = max(1 << 19, min(tile_target, a_tile_budget // 5))
    max_tn = max(128, (a_tile_target // (Bt * Cp * 4) // 128) * 128)
    num_nt = _cdiv(Np, max_tn)
    tN = _round_up(_cdiv(Np, num_nt), 128)
    Np = num_nt * tN

    if (Bp, Cp, Np) != (B, C, N):
        A1 = jnp.pad(A1, ((0, Bp - B), (0, Cp - C), (0, Np - N)))

    # pass 1: X = softmax(A1 @ A1^T)
    gram_kernel = functools.partial(
        _gram_softmax_kernel, c_real=C, c_pad=Cp, feed_bf16=feed_bf16)
    X = pl.pallas_call(
        gram_kernel,
        out_shape=jax.ShapeDtypeStruct((Bp, Cp, Cp), x_dtype),
        grid_spec=pltpu.PrefetchScalarGridSpec(
            num_scalar_prefetch=0,
            grid=(num_bb, num_nt),
            in_specs=[pl.BlockSpec((Bt, Cp, tN), lambda bb, nt: (bb, 0, nt))],
            out_specs=pl.BlockSpec((Bt, Cp, Cp), lambda bb, nt: (bb, 0, 0)),
            scratch_shapes=[pltpu.VMEM((Bt, Cp, Cp), jnp.float32)]),
        compiler_params=pltpu.CompilerParams(
            dimension_semantics=("parallel", "arbitrary"),
            vmem_limit_bytes=vmem_budget),
    )(A1)

    # pass 2: E = beta * (X^T @ A1) + A1
    apply_kernel = functools.partial(_apply_kernel, feed_bf16=feed_bf16)
    E = pl.pallas_call(
        apply_kernel,
        out_shape=jax.ShapeDtypeStruct((Bp, Cp, Np), A.dtype),
        grid_spec=pltpu.PrefetchScalarGridSpec(
            num_scalar_prefetch=0,
            grid=(num_bb, num_nt),
            in_specs=[
                pl.BlockSpec(memory_space=pltpu.SMEM),                    # beta
                pl.BlockSpec((Bt, Cp, Cp), lambda bb, nt: (bb, 0, 0)),    # X
                pl.BlockSpec((Bt, Cp, tN), lambda bb, nt: (bb, 0, nt)),   # A1
            ],
            out_specs=pl.BlockSpec((Bt, Cp, tN), lambda bb, nt: (bb, 0, nt)),
        ),
        compiler_params=pltpu.CompilerParams(
            dimension_semantics=("parallel", "parallel"),
            vmem_limit_bytes=vmem_budget),
    )(beta, X, A1)

    return E[:B, :C, :N].reshape(B, C, H, W)


def _reference(A, beta, mxu_bf16):
    """Pure-JAX reference. mxu_bf16 mirrors the kernel's bf16 MXU feeds."""
    B, C, H, W = A.shape
    N = H * W
    A1 = A.reshape(B, C, N)
    a = A1.astype(jnp.bfloat16) if mxu_bf16 else A1
    G = jnp.einsum("bcn,bdn->bcd", a, a, preferred_element_type=jnp.float32)
    X = jax.nn.softmax(G, axis=-1)
    x = X.astype(jnp.bfloat16) if mxu_bf16 else X
    XA1 = jnp.einsum("bcd,bcn->bdn", x, a, preferred_element_type=jnp.float32)
    return (beta[0] * XA1 + A1).reshape(B, C, H, W)


if __name__ == "__main__":
    key = jax.random.PRNGKey(0)

    # Module's __init__ has beta = zeros(1); use a deterministic nonzero value
    # so the attention path actually contributes to the output.
    beta = jnp.array([0.5], dtype=jnp.float32)

    # Case 1: tiny C -> f32 MXU feed, fused single-pass path.
    B, C, H, W = 2, 4, 16, 16
    A = jax.random.normal(key, (B, C, H, W), dtype=jnp.float32)
    E = channel_attention(A, beta)
    jax.block_until_ready(E)
    E_ref = _reference(A, beta, mxu_bf16=False)
    assert E.shape == (B, C, H, W)
    assert jnp.allclose(E, E_ref, atol=2e-3, rtol=2e-3), "fused f32 path mismatch"

    # Case 2: same inputs through the two-pass (VMEM-spill) fallback path.
    E2 = channel_attention(A, beta, _force_two_pass=True)
    jax.block_until_ready(E2)
    assert jnp.allclose(E2, E_ref, atol=2e-3, rtol=2e-3), "two-pass path mismatch"

    # Case 3: C >= 16 -> bf16 MXU feed (fused path).
    A3 = jax.random.normal(jax.random.PRNGKey(1), (2, 32, 16, 16),
                           dtype=jnp.float32)
    E3 = channel_attention(A3, beta)
    jax.block_until_ready(E3)
    E3_bf = _reference(A3, beta, mxu_bf16=True)
    E3_f32 = _reference(A3, beta, mxu_bf16=False)
    assert E3.shape == A3.shape
    assert jnp.allclose(E3, E3_bf, atol=2e-2, rtol=2e-2), "mismatch vs bf16 reference"
    assert jnp.allclose(E3, E3_f32, atol=5e-2, rtol=5e-2), "mismatch vs f32 reference"

    print("KERNEL_OK")
</pallas_src>

<mosaic_0001>
module attributes {stable_mosaic.version = 11 : i64} {
  func.func @_fused_kernel(%arg0: i32, %arg1: memref<1xf32, #tpu.memory_space<smem>>, %arg2: memref<1x8x256xf32, #tpu.memory_space<vmem>>, %arg3: memref<1x8x256xf32, #tpu.memory_space<vmem>>) attributes {dimension_semantics = [#tpu.dimension_semantics<parallel>], iteration_bounds = array<i64: 2>, scalar_prefetch = 0 : i64, scratch_operands = 0 : i64, tpu.core_type = #tpu.core_type<tc>, window_params = [{transform_indices = @transform_0, window_bounds = array<i64: 1>}, {transform_indices = @transform_1, window_bounds = array<i64: 1, 8, 256>}, {transform_indices = @transform_2, window_bounds = array<i64: 1, 8, 256>}]} {
    %c0 = arith.constant 0 : index
    %c0_0 = arith.constant 0 : index
    %c0_1 = arith.constant 0 : index
    %0 = vector.load %arg2[%c0, %c0_0, %c0_1] : memref<1x8x256xf32, #tpu.memory_space<vmem>>, vector<1x8x256xf32>
    %cst = arith.constant dense<0.000000e+00> : vector<1x8x8xf32>
    %1 = tpu.matmul %0, %0, %cst {dimension_numbers = #tpu.dot_dimension_numbers<[2], [2], [1], [1], [0, 0, 0, 1, 1, 1], [0], [0]>} : vector<1x8x256xf32>, vector<1x8x256xf32>, vector<1x8x8xf32> -> vector<1x8x8xf32>
    %2 = tpu.iota {dimensions = array<i32: 1>} : vector<8x8xi32>
    %c4_i32 = arith.constant 4 : i32
    %3 = vector.broadcast %c4_i32 : i32 to vector<8x8xi32>
    %4 = arith.cmpi slt, %2, %3 : vector<8x8xi32>
    %5 = vector.shape_cast %4 : vector<8x8xi1> to vector<1x8x8xi1>
    %cst_2 = arith.constant -1.000000e+30 : f32
    %6 = vector.broadcast %cst_2 : f32 to vector<1x8x8xf32>
    %7 = arith.select %5, %1, %6 : vector<1x8x8xi1>, vector<1x8x8xf32>
    %cst_3 = arith.constant dense<0xFF800000> : vector<1x8xf32>
    %8 = vector.multi_reduction <maximumf>, %7, %cst_3 [2] : vector<1x8x8xf32> to vector<1x8xf32>
    %9 = vector.shape_cast %8 : vector<1x8xf32> to vector<1x8x1xf32>
    %10 = vector.broadcast %9 : vector<1x8x1xf32> to vector<1x8x8xf32>
    %11 = arith.subf %7, %10 : vector<1x8x8xf32>
    %12 = math.exp %11 : vector<1x8x8xf32>
    %cst_4 = arith.constant dense<0.000000e+00> : vector<1x8xf32>
    %13 = vector.multi_reduction <add>, %12, %cst_4 [2] : vector<1x8x8xf32> to vector<1x8xf32>
    %14 = vector.shape_cast %13 : vector<1x8xf32> to vector<1x8x1xf32>
    %15 = vector.broadcast %14 : vector<1x8x1xf32> to vector<1x8x8xf32>
    %16 = arith.divf %12, %15 : vector<1x8x8xf32>
    %cst_5 = arith.constant dense<0.000000e+00> : vector<1x8x256xf32>
    %17 = tpu.matmul %16, %0, %cst_5 {dimension_numbers = #tpu.dot_dimension_numbers<[1], [1], [2], [2], [0, 0, 0, 2, 1, 2], [0], [0]>} : vector<1x8x8xf32>, vector<1x8x256xf32>, vector<1x8x256xf32> -> vector<1x8x256xf32>
    %c0_6 = arith.constant 0 : index
    %18 = memref.load %arg1[%c0_6] : memref<1xf32, #tpu.memory_space<smem>>
    %19 = vector.broadcast %18 : f32 to vector<1x8x256xf32>
    %20 = arith.mulf %19, %17 : vector<1x8x256xf32>
    %21 = arith.addf %20, %0 : vector<1x8x256xf32>
    %c0_7 = arith.constant 0 : index
    %c0_8 = arith.constant 0 : index
    %c0_9 = arith.constant 0 : index
    %22 = vector.load %arg3[%c0_7, %c0_8, %c0_9] : memref<1x8x256xf32, #tpu.memory_space<vmem>>, vector<1x8x256xf32>
    tpu.vector_store %arg3[%c0_7, %c0_8, %c0_9], %21 {strides = array<i32>} : memref<1x8x256xf32, #tpu.memory_space<vmem>>, vector<1x8x256xf32>,
    return
  }
  func.func @transform_0(%arg0: i32) -> i32 {
    %c0_i32 = arith.constant 0 : i32
    %c0_i32_0 = arith.constant 0 : i32
    return %c0_i32 : i32
  }
  func.func @transform_1(%arg0: i32) -> (i32, i32, i32) {
    %c0_i32 = arith.constant 0 : i32
    %c0_i32_0 = arith.constant 0 : i32
    %c0_i32_1 = arith.constant 0 : i32
    return %arg0, %c0_i32, %c0_i32_0 : i32, i32, i32
  }
  func.func @transform_2(%arg0: i32) -> (i32, i32, i32) {
    %c0_i32 = arith.constant 0 : i32
    %c0_i32_0 = arith.constant 0 : i32
    %c0_i32_1 = arith.constant 0 : i32
    return %arg0, %c0_i32, %c0_i32_0 : i32, i32, i32
  }
}

</mosaic_0001>

<bundles_post_ra>
// kernel: tpu_custom_call.1
= control target key start
LH: loop header
LB: loop body
LE: loop exit
PB: predicated region body
PF: predicated region fallthrough
CT: control target
= control target key end

     0   :  { %s803_s0 = inlined_call_operand.<no memory space> [shape: f32[1], index: 0, kind: input, shape index: {}]   ;;  %s804_s1 = inlined_call_operand.hbm [shape: f32[2,8,256], index: 1, kind: input, shape index: {}]   ;;  %s805_s2 = inlined_call_operand.hbm [shape: f32[2,8,256], index: 2, kind: output, shape index: {}]  }
   0x1   :  { %7 = sst [smem:[#allocation2]] %s803_s0 }
   0x2   :  { %8 = vsyncpa [#allocation4], 0 }
   0x3   :  { %10 = vsyncpa [#allocation4 + $0x1], 0 }
   0x4   :  { %11 = vsyncpa [#allocation5], 0 }
   0x5   :  { %13 = vsyncpa [#allocation5 + $0x1], 0  ;;  %s635_s11 = smov 0   ;;  %s637_s12 = smov 0  }
   0x6   :  { %s639_s13 = smov 0   ;;  %s641_s14 = smov 0  }
   0x7 LB: > { %s656_s0 = sadd.s32 4294967295, %s612_s14   ;;  %s448_s15 = sadd.s32 4294967294, %s612_s14   ;;  %s612_s14 = sphi %s641_s14, %s820_s14   ;;  %s608_s13 = sphi %s639_s13, %s819_s13   ;;  %s604_s12 = sphi %s637_s12, %s818_s12   ;;  %s600_s11 = sphi %s635_s11, %s817_s11  }
   0x8   : > { %s660_s16 = sadd.s32 1, %s612_s14   ;;  %s47_s17 = sadd.s32 1, %s608_s13 }
   0x9   : > { %s44_s18 = ssub.s32 %s612_s14, %s660_s16  ;;  %p54_p0 = scmp.ne.s32.totalorder %s608_s13, %s604_s12 }
   0xa   : > { %p45_p1 = scmp.eq.s32.totalorder %s44_s18, 0  ;;  %p55_p2 = scmp.eq.s32.totalorder %s612_s14, 0 }
   0xb   : > { %p60_p3 = scmp.ne.s32.totalorder %s604_s12, %s600_s11  ;;  %p61_p4 = scmp.eq.s32.totalorder %s656_s0, 0 }
   0xc   : > { %s672_s19 = scalar_select %p45_p1, %s608_s13, %s47_s17  }
   0xd   : > { %p674_p5 = por %p55_p2, %p54_p0  ;;  %p678_p6 = por %p61_p4, %p60_p3 }
   0xe   : > { %p84_p7 = scmp.eq.s32.totalorder %s656_s0, 1  ;;  %p90_p8 = scmp.eq.s32.totalorder %s448_s15, 1 }
   0xf   : > { %p477_p10 = scmp.lt.s32.totalorder %s612_s14, 2  ;;  %s113_s24 = sand.u32 1, %s608_s13  }
  0x10   : > { %p685_p11 = por %p84_p7, %p54_p0  ;;  %p689_p12 = por %p90_p8, %p60_p3 }
  0x11   : > { %s463_s25 = sshll.u32 %s612_s14, 8  ;;  %s451_s26 = sshll.u32 %s113_s24, 4 }
  0x12   : > { %s809_s22 = scalar_select %p685_p11, 1, 0 }
  0x13   : > { %s810_s23 = scalar_select %p689_p12, 1, 0 }
  0x14   : > { %s698_s29 = scalar_lea.hbm %s804_s1, %s463_s25  ;;  %s117_s30 = scalar_lea.vmem [#allocation3], %s451_s26 }
  0x15   : > { %s125_s3 = sshll.u32 %s117_s30, 4  ;;  %p702_p13 = pnand %p477_p10, %p674_p5  ;;  %s706_s3 = int_to_ptr.vmem [resolvable:$true] %s125_s3 }
  0x16   : > { %s114_s5 = scalar_lea.sflag [#allocation4], %s113_s24  ;;  %s516_s6 = scalar_lea.hbm %s698_s29, 256 }
  0x17   : > { %p517_p2 = scmp.ne.s32.totalorder %s698_s29, %s516_s6  ;;  %p518_p3 = pneg %p702_p13 }
  0x18   : > { %s521_s9 = scalar_lea.hbm %s804_s1, 512  ;;  %p522_p5 = scmp.lt.u32.totalorder %s698_s29, %s804_s1 }
  0x19   : > { %p519_p4 = pnand %p518_p3, %p517_p2  ;;  %p523_p8 = scmp.lt.u32.totalorder %s521_s9, %s516_s6 }
  0x1a   : > { %p525_p9 = scmp.lt.u32.totalorder %s516_s6, %s698_s29 }
  0x1b   : > { %p520_p7 = pneg %p519_p4  ;;  %p524_p10 = por %p523_p8, %p522_p5 }
  0x1d   : > { %p526_p0 = por %p525_p9, %p524_p10 }
  0x1f   : > { %p527_p1 = pnand %p526_p0, %p520_p7 }
  0x21   : > { %530 = shalt.err (!%p527_p1)
}
  0x22   : > { %s531_s17 = scalar_lea.vmem %s706_s3, 256  ;;  %s614_s18 = smov [#allocation3]  }
  0x23   : > { %p532_p2 = scmp.ne.s32.totalorder %s706_s3, %s531_s17  ;;  %s536_s20 = sshll.u32 %s614_s18, 4  ;;  %s537_s20 = int_to_ptr.vmem [resolvable:$false] %s536_s20 }
  0x24   : > { %s538_s24 = scalar_lea.vmem %s537_s20, 512  ;;  %p539_p11 = scmp.lt.s32.totalorder %s706_s3, %s537_s20 }
  0x25   : > { %p534_p4 = pnand %p532_p2, %p518_p3  ;;  %p540_p5 = scmp.lt.s32.totalorder %s538_s24, %s531_s17 }
  0x27   : > { %p535_p12 = pneg %p534_p4  ;;  %p541_p8 = por %p540_p5, %p539_p11 }
  0x29   : > { %p542_p9 = pnand %p541_p8, %p535_p12 }
  0x2b   : > { %545 = shalt.err (!%p542_p9)
}
  0x2c   : > { %472 = dma.hbm_to_vmem [thread:$0]  (!%p702_p13), %s698_s29, 256, %s706_s3, %s114_s5  }
  0x2d   : > { %p812_p0 = scmp.lt.s32.totalorder %s612_s14, 3  ;;  %p813_p1 = scmp.ge.s32.totalorder %s612_s14, 1 }
  0x2f   : > { %p131_p3 = pnand %p813_p1, %p812_p0 }
  0x30   : > { %s740_s25 = sand.u32 (!%p131_p3), 1, %s604_s12  }
  0x31   : > { %134 = sbr.rel (%p131_p3) target bundleno = 949 (0x3b5), region = 28  ;;  %s455_s26 = sshll.u32 (!%p131_p3), %s740_s25, 4 }
  0x32   : > { %s137_s27 = scalar_lea.sflag (!%p131_p3), [#allocation4], %s740_s25  ;;  %s140_s28 = scalar_lea.vmem (!%p131_p3), [#allocation3], %s455_s26 }
  0x38   : > { %591 = dma.done.wait (%p678_p6), %s137_s27, 256  }
  0x39   : > { %593 = vsyncadd (%p678_p6), %s137_s27, 4294967040  ;;  %v162_v0 = vld [vmem:[%s140_s28 + $0x8] sm:$0xff]  ;;  %v161_v1 = vld [vmem:[%s140_s28] sm:$0xff]  ;;  %v233_v2 = vlaneseq  ;;  %vm237_vm1 = vcmask 64512   ;;  %v615_v13 = vmov 0.0   ;;  %s355_s21 = sld [smem:[#allocation2]] }
  0x3a   : > { %163 = vmatprep.subr.mxu0 %v162_v0  ;;  %227 = vmatprep.mubr.f32.mxu0 %v162_v0  ;;  %s464_s29 = sshll.u32 %s656_s0, 8  ;;  %s160_s30 = scalar_lea.vmem [#allocation6], %s455_s26 }
  0x3b   : > { %164 = vmatpush1.xpose.msra.mxu0 %v161_v1  ;;  %284 = vmatprep.subr.mxu1 %v162_v0  ;;  %v234_v3 = vand.u32 127, %v233_v2  ;;  %s378_s3 = sshll.u32 %s160_s30, 4  ;;  %s759_s6 = scalar_lea.hbm %s805_s2, %s464_s29  ;;  %s761_s3 = int_to_ptr.vmem [resolvable:$true] %s378_s3 }
  0x3c   : > { %285 = vmatpush1.msra.mxu1 %v161_v1  ;;  %348 = vmatprep.mubr.f32.mxu1 %v615_v13  ;;  %s364_s7 = scalar_lea.sflag [#allocation5], %s740_s25  ;;  %s546_s0 = scalar_lea.vmem %s761_s3, 256 }
  0x3d   : > { %vm235_vm0 = vcmp.lt.s32.totalorder %v234_v3, 4  ;;  %p547_p6 = scmp.ne.s32.totalorder %s761_s3, %s546_s0  ;;  %p814_p11 = scmp.ne.s32.totalorder %s809_s22, 0 }
  0x3e   : > { %228 = vmatmul.mubr.f32.vlgmr.msra.gmra.mrb[0].mxu0 %v161_v1  ;;  %s616_s8 = smov [#allocation6]  }
  0x3f   : > { %v356_v18 = vstv %s355_s21  ;;  %p548_p12 = pnand %p547_p6, %p814_p11  ;;  %s550_s9 = sshll.u32 %s616_s8, 4  ;;  %s551_s9 = int_to_ptr.vmem [resolvable:$false] %s550_s9 }
  0x40   : > { %s552_s10 = scalar_lea.vmem %s551_s9, 512  ;;  %p553_p7 = scmp.lt.s32.totalorder %s761_s3, %s551_s9 }
  0x41   : > { %p549_p13 = pneg %p548_p12  ;;  %p554_p10 = scmp.lt.s32.totalorder %s552_s10, %s546_s0 }
  0x43   : > { %p555_p2 = por %p554_p10, %p553_p7 }
  0x45   : > { %p556_p4 = pnand %p555_p2, %p549_p13 }
 0x111   : > { %v229_v4 = vpop.f32.mrb[0].mxu0 }
 0x112   : > { %v236_v5 = vsel %vm235_vm0, %v229_v4, -1e+30  ;;  %v231_v6 = vpop.f32.mrb[1].mxu0 }
 0x113   : > { %v238_v7 = vsel %vm237_vm1, %v236_v5, -inf }
 0x114   : > { %239 = vmax.xlane.f32.xlu0 %v238_v7 }
 0x1a1   : > { %v240_v8 = vpop.xlane.xlu0 %239 }
 0x1a2   : > { %v241_v9 = vsub.f32 %v236_v5, %v240_v8 }
 0x1a4   : > { %v242_v10 = vmul.f32 1.442695, %v241_v9 }
 0x1a6   : > { %512 = vpow2.f32 %v242_v10 }
 0x1b0   : > { %v513_v11 = vpop.eup %512 }
 0x1b1   : > { %v244_v12 = vsel %vm237_vm1, %v513_v11, 0.0 }
 0x1b2   : > { %245 = vadd.xlane.f32.xlu0 %v244_v12 }
 0x23f   : > { %v246_v14 = vpop.xlane.xlu0 %245 }
 0x240   : > { %514 = vrcp.f32 %v246_v14 }
 0x24a   : > { %v515_v15 = vpop.eup %514 }
 0x24b   : > { %v248_v16 = vmul.f32 %v515_v15, %v513_v11 }
 0x24d   : > { %249 = vxpose.xlu1.b32.start.end [1/1] (short) (narrow) %v248_v16, 8 }
 0x2cd   : > { %v265_v17 = vpop.trf.xlu1 }
 0x2ce   : > { %457 = vmatmul.mubr.msk.f32.vlgmr.msra.gmra.mrb[0].mxu1 %vm237_vm1, %v265_v17 }
 0x3a1   : > { %v350_v19 = vpop.f32.mrb[0].mxu1 }
 0x3a2   : > { %v357_v20 = vmul.f32 %v356_v18, %v350_v19  ;;  %v352_v21 = vpop.f32.mrb[1].mxu1 }
 0x3a3   : > { %v358_v22 = vmul.f32 %v356_v18, %v352_v21 }
 0x3a4   : > { %v359_v23 = vadd.f32 %v357_v20, %v161_v1 }
 0x3a5   : > { %v360_v24 = vadd.f32 %v358_v22, %v162_v0 }
 0x3a6   : > { %361 = vst [vmem:[%s160_s30] sm:$0xff] %v359_v23 }
 0x3a7   : > { %362 = vst [vmem:[%s160_s30 + $0x8] sm:$0xff] %v360_v24 }
 0x3a8   : > { %559 = shalt.err (!%p556_p4)
}
 0x3a9   : > { %s560_s15 = scalar_lea.hbm %s759_s6, 256  ;;  %s564_s20 = scalar_lea.hbm %s805_s2, 512 }
 0x3aa   : > { %p561_p5 = scmp.ne.s32.totalorder %s759_s6, %s560_s15  ;;  %p565_p0 = scmp.lt.u32.totalorder %s759_s6, %s805_s2 }
 0x3ab   : > { %p566_p1 = scmp.lt.u32.totalorder %s564_s20, %s560_s15  ;;  %p568_p6 = scmp.lt.u32.totalorder %s560_s15, %s759_s6 }
 0x3ac   : > { %p562_p8 = pnand %p561_p5, %p814_p11 }
 0x3ad   : > { %p567_p3 = por %p566_p1, %p565_p0 }
 0x3ae   : > { %p563_p9 = pneg %p562_p8 }
 0x3af   : > { %p569_p12 = por %p568_p6, %p567_p3 }
 0x3b1   : > { %p570_p13 = pnand %p569_p12, %p563_p9 }
 0x3b3   : > { %573 = shalt.err (!%p570_p13)
}
 0x3b4   : > { %467 = dma.vmem_to_hbm [thread:$0]  (%p814_p11), %s761_s3, 256, %s759_s6, %s364_s7  }
 0x3b5 PF: > { %s390_s26 = sand.u32 1, %s600_s11   ;;  %p815_p7 = scmp.ne.s32.totalorder %s810_s23, 0 }
 0x3b6   : > { %p816_p10 = scmp.ge.s32.totalorder %s612_s14, 2  ;;  %s391_s27 = scalar_lea.sflag [#allocation5], %s390_s26 }
 0x3b8   : > { %p474_p2 = pnand %p816_p10, %p815_p7 }
 0x3ba   : > { %595 = dma.done.wait (!%p474_p2), %s391_s27, 256  }
 0x3bb   : > { %597 = vsyncadd (!%p474_p2), %s391_s27, 4294967040  ;;  %p16_p4 = scmp.ge.s32.totalorder %s660_s16, 4   ;;  %s817_s11 = smov %s604_s12 }
 0x3bc   : > { %s818_s12 = smov %s608_s13  ;;  %s819_s13 = smov %s672_s19 }
 0x3bd   : > { %s820_s14 = smov %s660_s16  ;;  %18 = sbr.rel (!%p16_p4) target bundleno = 7 (0x7), region = 73 }
 0x3c4   :  { %396 = vsyncpa [#allocation4], 1 }
 0x3c5   :  { %398 = vsyncpa [#allocation4 + $0x1], 1 }
 0x3c6   :  { %399 = vsyncpa [#allocation5], 1 }
 0x3c7   :  { %401 = vsyncpa [#allocation5 + $0x1], 1 }

</bundles_post_ra>
